<compile_context>
chip_gen: v7x
topology: tpu7x:2x2x1
jax: 0.10.0
libtpu: 0.0.40
codegen_flags: <defaults>
</compile_context>

<pallas_src>
import functools

import jax
import jax.numpy as jnp
from jax.experimental import pallas as pl
from jax.experimental.pallas import tpu as pltpu


def _cosine_loss_kernel(x_ref, tgt_ref, tbl_ref, o_ref, acc_ref, *, batch):
    """One batch tile: fused embedding gather + partial sum of cosine similarities."""
    i = pl.program_id(0)
    tb = x_ref.shape[0]                 # rows in this batch tile
    num_classes = tbl_ref.shape[0]

    @pl.when(i == 0)
    def _init():
        acc_ref[...] = jnp.zeros_like(acc_ref)

    x = x_ref[...].astype(jnp.float32)  # (TB, D) — keep all math in f32 (v5e-safe)
    tgt = tgt_ref[...]                  # (TB, 1) int32 class ids

    # ---- Fused embedding gather (exact f32, no HBM round-trip of emb_target).
    # Select-accumulate over the class axis; the (C, D) table is VMEM-resident.
    # Fine for small class counts. TODO(synk): for large C, switch to a one-hot
    # MXU matmul or a DMA row-gather instead of the O(C) select chain.
    e = jnp.zeros(x.shape, dtype=jnp.float32)
    for c in range(num_classes):        # static unroll, C is small
        e = jnp.where(tgt == c, tbl_ref[c:c + 1, :].astype(jnp.float32), e)

    # ---- Three lane (XLU) reductions; the normalized-inputs tile is never built.
    sum_xx = jnp.sum(x * x, axis=1, keepdims=True)   # (TB, 1)
    sum_ee = jnp.sum(e * e, axis=1, keepdims=True)   # (TB, 1)
    sum_xe = jnp.sum(x * e, axis=1, keepdims=True)   # (TB, 1)

    x_norm = jnp.sqrt(sum_xx)
    e_norm = jnp.sqrt(sum_ee)

    # F.normalize(p=2, dim=1): xn = x / max(||x||, 1e-12)  =>
    #   dot(xn, e) = sum_xe / max(||x||, 1e-12)
    #   ||xn||     = ||x||  / max(||x||, 1e-12)
    # cosine_similarity eps: cos = dot / max(||xn|| * ||e||, 1e-8)
    # (per-row scalar-column math only; exact sqrt/div kept for numerical parity)
    inv_xc = 1.0 / jnp.maximum(x_norm, 1e-12)
    dots = sum_xe * inv_xc
    xn_norm = x_norm * inv_xc
    cos = dots / jnp.maximum(xn_norm * e_norm, 1e-8)  # (TB, 1)

    # Mask padded rows of a ragged final tile before accumulating.
    row_ids = i * tb + jax.lax.broadcasted_iota(jnp.int32, (tb, 1), 0)
    cos = jnp.where(row_ids < batch, cos, 0.0)

    acc_ref[...] += jnp.sum(cos, axis=0, keepdims=True)   # (1, 1) running sum

    @pl.when(i == pl.num_programs(0) - 1)
    def _finalize():
        # Divide by the true batch size (not the padded tile count).
        o_ref[...] = 1.0 - acc_ref[...] * (1.0 / batch)


def cosine_loss(inputs, embedding_table, target, *, block_b=512):
    """loss = 1 - mean(cos_sim(normalize(inputs, dim=1), embedding_table[target])).

    inputs:          (B, D) float
    embedding_table: (C, D) float   (nn.Embedding weight)
    target:          (B,)   int
    """
    B, D = inputs.shape
    C, D2 = embedding_table.shape
    assert D == D2, (inputs.shape, embedding_table.shape)

    # Batch tile: whole batch (full-dim block, always layout-legal) or a
    # sublane-aligned tile for large B.
    if block_b >= B:
        tb = B
    else:
        tb = max(8, (block_b // 8) * 8)
    grid_b = pl.cdiv(B, tb)

    tgt2d = target.astype(jnp.int32).reshape(B, 1)

    kernel = functools.partial(_cosine_loss_kernel, batch=B)

    out = pl.pallas_call(
        kernel,
        out_shape=jax.ShapeDtypeStruct((1, 1), jnp.float32),
        grid_spec=pltpu.PrefetchScalarGridSpec(
            num_scalar_prefetch=0,
            grid=(grid_b,),
            in_specs=[
                pl.BlockSpec((tb, D), lambda i: (i, 0)),   # inputs tile (pipelined)
                pl.BlockSpec((tb, 1), lambda i: (i, 0)),   # target ids tile
                pl.BlockSpec((C, D), lambda i: (0, 0)),    # embedding table: VMEM-resident
            ],
            out_specs=pl.BlockSpec((1, 1), lambda i: (0, 0)),
            scratch_shapes=[pltpu.VMEM((1, 1), jnp.float32)],  # running sum(cos)
        ),
        compiler_params=pltpu.CompilerParams(
            # Single resident accumulator over the batch axis => "arbitrary".
            dimension_semantics=("arbitrary",),
            vmem_limit_bytes=32 * 1024 * 1024,
        ),
    )(inputs, tgt2d, embedding_table)
    return out[0, 0]


if __name__ == "__main__":
    key = jax.random.PRNGKey(0)
    k_in, k_emb, k_tgt = jax.random.split(key, 3)

    B, D, C = 8, 128, 16  # batch, embedding dim, number of classes

    inputs = jax.random.normal(k_in, (B, D), dtype=jnp.float32)
    # Deterministic synthetic embedding weights (nn.Embedding(C, D) equivalent).
    embedding_table = jax.random.normal(k_emb, (C, D), dtype=jnp.float32)
    target = jax.random.randint(k_tgt, (B,), 0, C, dtype=jnp.int32)

    loss = cosine_loss(inputs, embedding_table, target)
    loss = jax.block_until_ready(loss)

    # Reference check in plain JAX, mirroring the PyTorch forward.
    x_l2 = jnp.sqrt(jnp.sum(inputs * inputs, axis=1, keepdims=True))
    xn = inputs / jnp.maximum(x_l2, 1e-12)
    e = embedding_table[target]
    cos = jnp.sum(xn * e, axis=1) / jnp.maximum(
        jnp.linalg.norm(xn, axis=1) * jnp.linalg.norm(e, axis=1), 1e-8
    )
    ref = 1.0 - jnp.mean(cos)
    assert jnp.allclose(loss, ref, atol=1e-5, rtol=1e-5), (loss, ref)

    print("KERNEL_OK")
</pallas_src>

<mosaic_0001>
module attributes {stable_mosaic.version = 11 : i64} {
  func.func @_cosine_loss_kernel(%arg0: i32, %arg1: memref<8x128xf32, #tpu.memory_space<vmem>>, %arg2: memref<8x1xi32, #tpu.memory_space<vmem>>, %arg3: memref<16x128xf32, #tpu.memory_space<vmem>>, %arg4: memref<1x1xf32, #tpu.memory_space<vmem>>, %arg5: memref<1x1xf32, #tpu.memory_space<vmem>>) attributes {dimension_semantics = [#tpu.dimension_semantics<arbitrary>], iteration_bounds = array<i64: 1>, scalar_prefetch = 0 : i64, scratch_operands = 1 : i64, tpu.core_type = #tpu.core_type<tc>, window_params = [{transform_indices = @transform_0, window_bounds = array<i64: 8, 128>}, {transform_indices = @transform_1, window_bounds = array<i64: 8, 1>}, {pipeline_mode = #tpu.pipeline_mode<synchronous>, transform_indices = @transform_2, window_bounds = array<i64: 16, 128>}, {pipeline_mode = #tpu.pipeline_mode<synchronous>, transform_indices = @transform_3, window_bounds = array<i64: 1, 1>}]} {
    %c0_i32 = arith.constant 0 : i32
    %0 = arith.cmpi eq, %arg0, %c0_i32 : i32
    %1 = arith.extui %0 : i1 to i32
    %c0_i32_0 = arith.constant 0 : i32
    %2 = arith.cmpi ne, %1, %c0_i32_0 : i32
    scf.if %2 {
      %cst_38 = arith.constant 0.000000e+00 : f32
      %171 = vector.broadcast %cst_38 : f32 to vector<1x1xf32>
      %c0_39 = arith.constant 0 : index
      %c0_40 = arith.constant 0 : index
      %172 = vector.load %arg5[%c0_39, %c0_40] : memref<1x1xf32, #tpu.memory_space<vmem>>, vector<1x1xf32>
      tpu.vector_store %arg5[%c0_39, %c0_40], %171 {strides = array<i32>} : memref<1x1xf32, #tpu.memory_space<vmem>>, vector<1x1xf32>,
    } else {
    }
    %c0 = arith.constant 0 : index
    %c0_1 = arith.constant 0 : index
    %3 = vector.load %arg1[%c0, %c0_1] : memref<8x128xf32, #tpu.memory_space<vmem>>, vector<8x128xf32>
    %c0_2 = arith.constant 0 : index
    %c0_3 = arith.constant 0 : index
    %4 = vector.load %arg2[%c0_2, %c0_3] : memref<8x1xi32, #tpu.memory_space<vmem>>, vector<8x1xi32>
    %cst = arith.constant 0.000000e+00 : f32
    %5 = vector.broadcast %cst : f32 to vector<8x128xf32>
    %c0_i32_4 = arith.constant 0 : i32
    %6 = vector.broadcast %c0_i32_4 : i32 to vector<8x1xi32>
    %7 = arith.cmpi eq, %4, %6 : vector<8x1xi32>
    %c0_5 = arith.constant 0 : index
    %c0_6 = arith.constant 0 : index
    %8 = vector.load %arg3[%c0_5, %c0_6] : memref<16x128xf32, #tpu.memory_space<vmem>>, vector<1x128xf32>
    %9 = vector.shape_cast %7 : vector<8x1xi1> to vector<8x1xi1>
    %10 = vector.broadcast %9 : vector<8x1xi1> to vector<8x128xi1>
    %11 = vector.shape_cast %8 : vector<1x128xf32> to vector<1x128xf32>
    %12 = vector.broadcast %11 : vector<1x128xf32> to vector<8x128xf32>
    %13 = arith.select %10, %12, %5 : vector<8x128xi1>, vector<8x128xf32>
    %c1_i32 = arith.constant 1 : i32
    %14 = vector.broadcast %c1_i32 : i32 to vector<8x1xi32>
    %15 = arith.cmpi eq, %4, %14 : vector<8x1xi32>
    %c1 = arith.constant 1 : index
    %c0_7 = arith.constant 0 : index
    %16 = vector.load %arg3[%c1, %c0_7] : memref<16x128xf32, #tpu.memory_space<vmem>>, vector<1x128xf32>
    %17 = vector.shape_cast %15 : vector<8x1xi1> to vector<8x1xi1>
    %18 = vector.broadcast %17 : vector<8x1xi1> to vector<8x128xi1>
    %19 = vector.shape_cast %16 : vector<1x128xf32> to vector<1x128xf32>
    %20 = vector.broadcast %19 : vector<1x128xf32> to vector<8x128xf32>
    %21 = arith.select %18, %20, %13 : vector<8x128xi1>, vector<8x128xf32>
    %c2_i32 = arith.constant 2 : i32
    %22 = vector.broadcast %c2_i32 : i32 to vector<8x1xi32>
    %23 = arith.cmpi eq, %4, %22 : vector<8x1xi32>
    %c2 = arith.constant 2 : index
    %c0_8 = arith.constant 0 : index
    %24 = vector.load %arg3[%c2, %c0_8] : memref<16x128xf32, #tpu.memory_space<vmem>>, vector<1x128xf32>
    %25 = vector.shape_cast %23 : vector<8x1xi1> to vector<8x1xi1>
    %26 = vector.broadcast %25 : vector<8x1xi1> to vector<8x128xi1>
    %27 = vector.shape_cast %24 : vector<1x128xf32> to vector<1x128xf32>
    %28 = vector.broadcast %27 : vector<1x128xf32> to vector<8x128xf32>
    %29 = arith.select %26, %28, %21 : vector<8x128xi1>, vector<8x128xf32>
    %c3_i32 = arith.constant 3 : i32
    %30 = vector.broadcast %c3_i32 : i32 to vector<8x1xi32>
    %31 = arith.cmpi eq, %4, %30 : vector<8x1xi32>
    %c3 = arith.constant 3 : index
    %c0_9 = arith.constant 0 : index
    %32 = vector.load %arg3[%c3, %c0_9] : memref<16x128xf32, #tpu.memory_space<vmem>>, vector<1x128xf32>
    %33 = vector.shape_cast %31 : vector<8x1xi1> to vector<8x1xi1>
    %34 = vector.broadcast %33 : vector<8x1xi1> to vector<8x128xi1>
    %35 = vector.shape_cast %32 : vector<1x128xf32> to vector<1x128xf32>
    %36 = vector.broadcast %35 : vector<1x128xf32> to vector<8x128xf32>
    %37 = arith.select %34, %36, %29 : vector<8x128xi1>, vector<8x128xf32>
    %c4_i32 = arith.constant 4 : i32
    %38 = vector.broadcast %c4_i32 : i32 to vector<8x1xi32>
    %39 = arith.cmpi eq, %4, %38 : vector<8x1xi32>
    %c4 = arith.constant 4 : index
    %c0_10 = arith.constant 0 : index
    %40 = vector.load %arg3[%c4, %c0_10] : memref<16x128xf32, #tpu.memory_space<vmem>>, vector<1x128xf32>
    %41 = vector.shape_cast %39 : vector<8x1xi1> to vector<8x1xi1>
    %42 = vector.broadcast %41 : vector<8x1xi1> to vector<8x128xi1>
    %43 = vector.shape_cast %40 : vector<1x128xf32> to vector<1x128xf32>
    %44 = vector.broadcast %43 : vector<1x128xf32> to vector<8x128xf32>
    %45 = arith.select %42, %44, %37 : vector<8x128xi1>, vector<8x128xf32>
    %c5_i32 = arith.constant 5 : i32
    %46 = vector.broadcast %c5_i32 : i32 to vector<8x1xi32>
    %47 = arith.cmpi eq, %4, %46 : vector<8x1xi32>
    %c5 = arith.constant 5 : index
    %c0_11 = arith.constant 0 : index
    %48 = vector.load %arg3[%c5, %c0_11] : memref<16x128xf32, #tpu.memory_space<vmem>>, vector<1x128xf32>
    %49 = vector.shape_cast %47 : vector<8x1xi1> to vector<8x1xi1>
    %50 = vector.broadcast %49 : vector<8x1xi1> to vector<8x128xi1>
    %51 = vector.shape_cast %48 : vector<1x128xf32> to vector<1x128xf32>
    %52 = vector.broadcast %51 : vector<1x128xf32> to vector<8x128xf32>
    %53 = arith.select %50, %52, %45 : vector<8x128xi1>, vector<8x128xf32>
    %c6_i32 = arith.constant 6 : i32
    %54 = vector.broadcast %c6_i32 : i32 to vector<8x1xi32>
    %55 = arith.cmpi eq, %4, %54 : vector<8x1xi32>
    %c6 = arith.constant 6 : index
    %c0_12 = arith.constant 0 : index
    %56 = vector.load %arg3[%c6, %c0_12] : memref<16x128xf32, #tpu.memory_space<vmem>>, vector<1x128xf32>
    %57 = vector.shape_cast %55 : vector<8x1xi1> to vector<8x1xi1>
    %58 = vector.broadcast %57 : vector<8x1xi1> to vector<8x128xi1>
    %59 = vector.shape_cast %56 : vector<1x128xf32> to vector<1x128xf32>
    %60 = vector.broadcast %59 : vector<1x128xf32> to vector<8x128xf32>
    %61 = arith.select %58, %60, %53 : vector<8x128xi1>, vector<8x128xf32>
    %c7_i32 = arith.constant 7 : i32
    %62 = vector.broadcast %c7_i32 : i32 to vector<8x1xi32>
    %63 = arith.cmpi eq, %4, %62 : vector<8x1xi32>
    %c7 = arith.constant 7 : index
    %c0_13 = arith.constant 0 : index
    %64 = vector.load %arg3[%c7, %c0_13] : memref<16x128xf32, #tpu.memory_space<vmem>>, vector<1x128xf32>
    %65 = vector.shape_cast %63 : vector<8x1xi1> to vector<8x1xi1>
    %66 = vector.broadcast %65 : vector<8x1xi1> to vector<8x128xi1>
    %67 = vector.shape_cast %64 : vector<1x128xf32> to vector<1x128xf32>
    %68 = vector.broadcast %67 : vector<1x128xf32> to vector<8x128xf32>
    %69 = arith.select %66, %68, %61 : vector<8x128xi1>, vector<8x128xf32>
    %c8_i32 = arith.constant 8 : i32
    %70 = vector.broadcast %c8_i32 : i32 to vector<8x1xi32>
    %71 = arith.cmpi eq, %4, %70 : vector<8x1xi32>
    %c8 = arith.constant 8 : index
    %c0_14 = arith.constant 0 : index
    %72 = vector.load %arg3[%c8, %c0_14] : memref<16x128xf32, #tpu.memory_space<vmem>>, vector<1x128xf32>
    %73 = vector.shape_cast %71 : vector<8x1xi1> to vector<8x1xi1>
    %74 = vector.broadcast %73 : vector<8x1xi1> to vector<8x128xi1>
    %75 = vector.shape_cast %72 : vector<1x128xf32> to vector<1x128xf32>
    %76 = vector.broadcast %75 : vector<1x128xf32> to vector<8x128xf32>
    %77 = arith.select %74, %76, %69 : vector<8x128xi1>, vector<8x128xf32>
    %c9_i32 = arith.constant 9 : i32
    %78 = vector.broadcast %c9_i32 : i32 to vector<8x1xi32>
    %79 = arith.cmpi eq, %4, %78 : vector<8x1xi32>
    %c9 = arith.constant 9 : index
    %c0_15 = arith.constant 0 : index
    %80 = vector.load %arg3[%c9, %c0_15] : memref<16x128xf32, #tpu.memory_space<vmem>>, vector<1x128xf32>
    %81 = vector.shape_cast %79 : vector<8x1xi1> to vector<8x1xi1>
    %82 = vector.broadcast %81 : vector<8x1xi1> to vector<8x128xi1>
    %83 = vector.shape_cast %80 : vector<1x128xf32> to vector<1x128xf32>
    %84 = vector.broadcast %83 : vector<1x128xf32> to vector<8x128xf32>
    %85 = arith.select %82, %84, %77 : vector<8x128xi1>, vector<8x128xf32>
    %c10_i32 = arith.constant 10 : i32
    %86 = vector.broadcast %c10_i32 : i32 to vector<8x1xi32>
    %87 = arith.cmpi eq, %4, %86 : vector<8x1xi32>
    %c10 = arith.constant 10 : index
    %c0_16 = arith.constant 0 : index
    %88 = vector.load %arg3[%c10, %c0_16] : memref<16x128xf32, #tpu.memory_space<vmem>>, vector<1x128xf32>
    %89 = vector.shape_cast %87 : vector<8x1xi1> to vector<8x1xi1>
    %90 = vector.broadcast %89 : vector<8x1xi1> to vector<8x128xi1>
    %91 = vector.shape_cast %88 : vector<1x128xf32> to vector<1x128xf32>
    %92 = vector.broadcast %91 : vector<1x128xf32> to vector<8x128xf32>
    %93 = arith.select %90, %92, %85 : vector<8x128xi1>, vector<8x128xf32>
    %c11_i32 = arith.constant 11 : i32
    %94 = vector.broadcast %c11_i32 : i32 to vector<8x1xi32>
    %95 = arith.cmpi eq, %4, %94 : vector<8x1xi32>
    %c11 = arith.constant 11 : index
    %c0_17 = arith.constant 0 : index
    %96 = vector.load %arg3[%c11, %c0_17] : memref<16x128xf32, #tpu.memory_space<vmem>>, vector<1x128xf32>
    %97 = vector.shape_cast %95 : vector<8x1xi1> to vector<8x1xi1>
    %98 = vector.broadcast %97 : vector<8x1xi1> to vector<8x128xi1>
    %99 = vector.shape_cast %96 : vector<1x128xf32> to vector<1x128xf32>
    %100 = vector.broadcast %99 : vector<1x128xf32> to vector<8x128xf32>
    %101 = arith.select %98, %100, %93 : vector<8x128xi1>, vector<8x128xf32>
    %c12_i32 = arith.constant 12 : i32
    %102 = vector.broadcast %c12_i32 : i32 to vector<8x1xi32>
    %103 = arith.cmpi eq, %4, %102 : vector<8x1xi32>
    %c12 = arith.constant 12 : index
    %c0_18 = arith.constant 0 : index
    %104 = vector.load %arg3[%c12, %c0_18] : memref<16x128xf32, #tpu.memory_space<vmem>>, vector<1x128xf32>
    %105 = vector.shape_cast %103 : vector<8x1xi1> to vector<8x1xi1>
    %106 = vector.broadcast %105 : vector<8x1xi1> to vector<8x128xi1>
    %107 = vector.shape_cast %104 : vector<1x128xf32> to vector<1x128xf32>
    %108 = vector.broadcast %107 : vector<1x128xf32> to vector<8x128xf32>
    %109 = arith.select %106, %108, %101 : vector<8x128xi1>, vector<8x128xf32>
    %c13_i32 = arith.constant 13 : i32
    %110 = vector.broadcast %c13_i32 : i32 to vector<8x1xi32>
    %111 = arith.cmpi eq, %4, %110 : vector<8x1xi32>
    %c13 = arith.constant 13 : index
    %c0_19 = arith.constant 0 : index
    %112 = vector.load %arg3[%c13, %c0_19] : memref<16x128xf32, #tpu.memory_space<vmem>>, vector<1x128xf32>
    %113 = vector.shape_cast %111 : vector<8x1xi1> to vector<8x1xi1>
    %114 = vector.broadcast %113 : vector<8x1xi1> to vector<8x128xi1>
    %115 = vector.shape_cast %112 : vector<1x128xf32> to vector<1x128xf32>
    %116 = vector.broadcast %115 : vector<1x128xf32> to vector<8x128xf32>
    %117 = arith.select %114, %116, %109 : vector<8x128xi1>, vector<8x128xf32>
    %c14_i32 = arith.constant 14 : i32
    %118 = vector.broadcast %c14_i32 : i32 to vector<8x1xi32>
    %119 = arith.cmpi eq, %4, %118 : vector<8x1xi32>
    %c14 = arith.constant 14 : index
    %c0_20 = arith.constant 0 : index
    %120 = vector.load %arg3[%c14, %c0_20] : memref<16x128xf32, #tpu.memory_space<vmem>>, vector<1x128xf32>
    %121 = vector.shape_cast %119 : vector<8x1xi1> to vector<8x1xi1>
    %122 = vector.broadcast %121 : vector<8x1xi1> to vector<8x128xi1>
    %123 = vector.shape_cast %120 : vector<1x128xf32> to vector<1x128xf32>
    %124 = vector.broadcast %123 : vector<1x128xf32> to vector<8x128xf32>
    %125 = arith.select %122, %124, %117 : vector<8x128xi1>, vector<8x128xf32>
    %c15_i32 = arith.constant 15 : i32
    %126 = vector.broadcast %c15_i32 : i32 to vector<8x1xi32>
    %127 = arith.cmpi eq, %4, %126 : vector<8x1xi32>
    %c15 = arith.constant 15 : index
    %c0_21 = arith.constant 0 : index
    %128 = vector.load %arg3[%c15, %c0_21] : memref<16x128xf32, #tpu.memory_space<vmem>>, vector<1x128xf32>
    %129 = vector.shape_cast %127 : vector<8x1xi1> to vector<8x1xi1>
    %130 = vector.broadcast %129 : vector<8x1xi1> to vector<8x128xi1>
    %131 = vector.shape_cast %128 : vector<1x128xf32> to vector<1x128xf32>
    %132 = vector.broadcast %131 : vector<1x128xf32> to vector<8x128xf32>
    %133 = arith.select %130, %132, %125 : vector<8x128xi1>, vector<8x128xf32>
    %134 = arith.mulf %3, %3 : vector<8x128xf32>
    %cst_22 = arith.constant dense<0.000000e+00> : vector<8xf32>
    %135 = vector.multi_reduction <add>, %134, %cst_22 [1] : vector<8x128xf32> to vector<8xf32>
    %136 = vector.shape_cast %135 : vector<8xf32> to vector<8x1xf32>
    %137 = arith.mulf %133, %133 : vector<8x128xf32>
    %cst_23 = arith.constant dense<0.000000e+00> : vector<8xf32>
    %138 = vector.multi_reduction <add>, %137, %cst_23 [1] : vector<8x128xf32> to vector<8xf32>
    %139 = vector.shape_cast %138 : vector<8xf32> to vector<8x1xf32>
    %140 = arith.mulf %3, %133 : vector<8x128xf32>
    %cst_24 = arith.constant dense<0.000000e+00> : vector<8xf32>
    %141 = vector.multi_reduction <add>, %140, %cst_24 [1] : vector<8x128xf32> to vector<8xf32>
    %142 = vector.shape_cast %141 : vector<8xf32> to vector<8x1xf32>
    %143 = math.sqrt %136 : vector<8x1xf32>
    %144 = math.sqrt %139 : vector<8x1xf32>
    %cst_25 = arith.constant 9.99999996E-13 : f32
    %145 = vector.broadcast %cst_25 : f32 to vector<8x1xf32>
    %146 = arith.maximumf %143, %145 : vector<8x1xf32>
    %cst_26 = arith.constant 1.000000e+00 : f32
    %147 = vector.broadcast %cst_26 : f32 to vector<8x1xf32>
    %148 = arith.divf %147, %146 : vector<8x1xf32>
    %149 = arith.mulf %142, %148 : vector<8x1xf32>
    %150 = arith.mulf %143, %148 : vector<8x1xf32>
    %151 = arith.mulf %150, %144 : vector<8x1xf32>
    %cst_27 = arith.constant 9.99999993E-9 : f32
    %152 = vector.broadcast %cst_27 : f32 to vector<8x1xf32>
    %153 = arith.maximumf %151, %152 : vector<8x1xf32>
    %154 = arith.divf %149, %153 : vector<8x1xf32>
    %c8_i32_28 = arith.constant 8 : i32
    %155 = arith.muli %arg0, %c8_i32_28 : i32
    %156 = tpu.iota {dimensions = array<i32: 0>} : vector<8x1xi32>
    %157 = vector.broadcast %155 : i32 to vector<8x1xi32>
    %158 = arith.addi %157, %156 : vector<8x1xi32>
    %c8_i32_29 = arith.constant 8 : i32
    %159 = vector.broadcast %c8_i32_29 : i32 to vector<8x1xi32>
    %160 = arith.cmpi slt, %158, %159 : vector<8x1xi32>
    %cst_30 = arith.constant 0.000000e+00 : f32
    %161 = vector.broadcast %cst_30 : f32 to vector<8x1xf32>
    %162 = arith.select %160, %154, %161 : vector<8x1xi1>, vector<8x1xf32>
    %c0_31 = arith.constant 0 : index
    %c0_32 = arith.constant 0 : index
    %163 = vector.load %arg5[%c0_31, %c0_32] : memref<1x1xf32, #tpu.memory_space<vmem>>, vector<1x1xf32>
    %cst_33 = arith.constant dense<0.000000e+00> : vector<1xf32>
    %164 = vector.multi_reduction <add>, %162, %cst_33 [0] : vector<8x1xf32> to vector<1xf32>
    %165 = vector.shape_cast %164 : vector<1xf32> to vector<1x1xf32>
    %166 = arith.addf %163, %165 : vector<1x1xf32>
    %c0_34 = arith.constant 0 : index
    %c0_35 = arith.constant 0 : index
    %167 = vector.load %arg5[%c0_34, %c0_35] : memref<1x1xf32, #tpu.memory_space<vmem>>, vector<1x1xf32>
    tpu.vector_store %arg5[%c0_34, %c0_35], %166 {strides = array<i32>} : memref<1x1xf32, #tpu.memory_space<vmem>>, vector<1x1xf32>,
    %c0_i32_36 = arith.constant 0 : i32
    %168 = arith.cmpi eq, %arg0, %c0_i32_36 : i32
    %169 = arith.extui %168 : i1 to i32
    %c0_i32_37 = arith.constant 0 : i32
    %170 = arith.cmpi ne, %169, %c0_i32_37 : i32
    scf.if %170 {
      %c0_38 = arith.constant 0 : index
      %c0_39 = arith.constant 0 : index
      %171 = vector.load %arg5[%c0_38, %c0_39] : memref<1x1xf32, #tpu.memory_space<vmem>>, vector<1x1xf32>
      %cst_40 = arith.constant 1.250000e-01 : f32
      %172 = vector.broadcast %cst_40 : f32 to vector<1x1xf32>
      %173 = arith.mulf %171, %172 : vector<1x1xf32>
      %cst_41 = arith.constant 1.000000e+00 : f32
      %174 = vector.broadcast %cst_41 : f32 to vector<1x1xf32>
      %175 = arith.subf %174, %173 : vector<1x1xf32>
      %c0_42 = arith.constant 0 : index
      %c0_43 = arith.constant 0 : index
      %176 = vector.load %arg4[%c0_42, %c0_43] : memref<1x1xf32, #tpu.memory_space<vmem>>, vector<1x1xf32>
      tpu.vector_store %arg4[%c0_42, %c0_43], %175 {strides = array<i32>} : memref<1x1xf32, #tpu.memory_space<vmem>>, vector<1x1xf32>,
    } else {
    }
    return
  }
  func.func @transform_0(%arg0: i32) -> (i32, i32) {
    %c0_i32 = arith.constant 0 : i32
    %c0_i32_0 = arith.constant 0 : i32
    return %arg0, %c0_i32 : i32, i32
  }
  func.func @transform_1(%arg0: i32) -> (i32, i32) {
    %c0_i32 = arith.constant 0 : i32
    %c0_i32_0 = arith.constant 0 : i32
    return %arg0, %c0_i32 : i32, i32
  }
  func.func @transform_2(%arg0: i32) -> (i32, i32) {
    %c0_i32 = arith.constant 0 : i32
    %c0_i32_0 = arith.constant 0 : i32
    %c0_i32_1 = arith.constant 0 : i32
    return %c0_i32, %c0_i32_0 : i32, i32
  }
  func.func @transform_3(%arg0: i32) -> (i32, i32) {
    %c0_i32 = arith.constant 0 : i32
    %c0_i32_0 = arith.constant 0 : i32
    %c0_i32_1 = arith.constant 0 : i32
    return %c0_i32, %c0_i32_0 : i32, i32
  }
}

</mosaic_0001>

<bundles_post_ra>
// kernel: tpu_custom_call.1
= control target key start
LH: loop header
LB: loop body
LE: loop exit
PB: predicated region body
PF: predicated region fallthrough
CT: control target
= control target key end

     0   :  { %8 = vsyncpa [#allocation4], 0  ;;  %s483_s0 = inlined_call_operand.hbm [shape: f32[8,128], index: 0, kind: input, shape index: {}]   ;;  %s484_s1 = inlined_call_operand.vmem [shape: s32[8,1], index: 1, kind: input, shape index: {}]   ;;  %s485_s2 = inlined_call_operand.vmem [shape: f32[16,128], index: 2, kind: input, shape index: {}]   ;;  %s486_s3 = inlined_call_operand.hbm [shape: f32[1,1], index: 3, kind: output, shape index: {}]  }
   0x1   :  { %9 = vsyncpa [#allocation5], 0  ;;  %s376_s12 = smov [#allocation3]   ;;  %s328_s16 = scalar_lea.hbm %s483_s0, 128 }
   0x2   :  { %s16_s13 = sshll.u32 %s376_s12, 4  ;;  %p329_p0 = scmp.ne.s32.totalorder %s483_s0, %s328_s16  ;;  %s17_s13 = int_to_ptr.vmem [resolvable:$true] %s16_s13 }
   0x3   :  { %p332_p1 = scmp.lt.u32.totalorder %s328_s16, %s483_s0 }
   0x5   :  { %p334_p2 = pnand %p332_p1, %p329_p0 }
   0x7   :  { %337 = shalt.err (!%p334_p2)
}
   0x8   :  { %s338_s21 = scalar_lea.vmem %s17_s13, 128  ;;  %p343_p4 = scmp.lt.s32.totalorder %s17_s13, %s17_s13 }
   0x9   :  { %p339_p3 = scmp.ne.s32.totalorder %s17_s13, %s338_s21  ;;  %p344_p5 = scmp.lt.s32.totalorder %s338_s21, %s338_s21 }
   0xb   :  { %p345_p6 = por %p344_p5, %p343_p4 }
   0xd   :  { %p346_p7 = pnand %p345_p6, %p339_p3 }
   0xf   :  { %349 = shalt.err (!%p346_p7)
}
  0x10   :  { %19 = dma.hbm_to_vmem [thread:$0]  %s483_s0, 128, %s17_s13, [#allocation4]  }
  0x11   :  { %372 = dma.done.wait [#allocation4], 128  }
  0x12   :  { %373 = vsyncadd [#allocation4], 4294967168  ;;  %v377_v0 = vmov 0   ;;  %v34_v1 = vld [vmem:[%s484_s1] sm:$0xff]  ;;  %v306_v43 = vld [vmem:[%s485_s2 + $0x8] ss:$0 sm:$0xff] }
  0x13   :  { %319 = vset.pattern.permute.xlu1 %v377_v0  ;;  %318 = vset.pattern.permute.xlu0 %v377_v0  ;;  %vm59_vm0 = vcmp.eq.s32.totalorder %v34_v1, 2  ;;  %vm35_vm1 = vcmp.eq.s32.totalorder %v34_v1, 0  ;;  %vm71_vm2 = vcmp.eq.s32.totalorder %v34_v1, 3  ;;  %vm47_vm3 = vcmp.eq.s32.totalorder %v34_v1, 1  ;;  %v415_v18 = vld [vmem:[#allocation3] sm:$0xff] }
  0x14   :  { %v61_v2 = vsel %vm59_vm0, 1, %v377_v0  ;;  %v37_v3 = vsel %vm35_vm1, 1, %v377_v0  ;;  %v73_v4 = vsel %vm71_vm2, 1, %v377_v0  ;;  %v49_v5 = vsel %vm47_vm3, 1, %v377_v0  ;;  %v298_v22 = vld [vmem:[%s485_s2] ss:$0 sm:$0xff] }
  0x15   :  { %63 = vperm.xlu1 %319, %v61_v2   ;;  %39 = vperm.xlu0 %318, %v37_v3   ;;  %vm95_vm4 = vcmp.eq.s32.totalorder %v34_v1, 5  ;;  %vm83_vm5 = vcmp.eq.s32.totalorder %v34_v1, 4  ;;  %vm119_vm6 = vcmp.eq.s32.totalorder %v34_v1, 7  ;;  %vm107_vm7 = vcmp.eq.s32.totalorder %v34_v1, 6  ;;  %v299_v23 = vld [vmem:[%s485_s2 + $0x1] ss:$0 sm:$0xff] }
  0x16   :  { %v97_v6 = vsel %vm95_vm4, 1, %v377_v0  ;;  %v85_v7 = vsel %vm83_vm5, 1, %v377_v0  ;;  %v121_v8 = vsel %vm119_vm6, 1, %v377_v0  ;;  %v109_v9 = vsel %vm107_vm7, 1, %v377_v0  ;;  %v300_v25 = vld [vmem:[%s485_s2 + $0x2] ss:$0 sm:$0xff] }
  0x17   :  { %vm143_vm8 = vcmp.eq.s32.totalorder %v34_v1, 9  ;;  %vm131_vm9 = vcmp.eq.s32.totalorder %v34_v1, 8  ;;  %vm167_vm10 = vcmp.eq.s32.totalorder %v34_v1, 11  ;;  %vm155_vm11 = vcmp.eq.s32.totalorder %v34_v1, 10  ;;  %v301_v28 = vld [vmem:[%s485_s2 + $0x3] ss:$0 sm:$0xff] }
  0x18   :  { %v145_v10 = vsel %vm143_vm8, 1, %v377_v0  ;;  %v133_v11 = vsel %vm131_vm9, 1, %v377_v0  ;;  %v169_v12 = vsel %vm167_vm10, 1, %v377_v0  ;;  %v157_v13 = vsel %vm155_vm11, 1, %v377_v0  ;;  %v302_v31 = vld [vmem:[%s485_s2 + $0x4] ss:$0 sm:$0xff] }
  0x19   :  { %75 = vperm.xlu1 %319, %v73_v4   ;;  %51 = vperm.xlu0 %318, %v49_v5   ;;  %vm191_vm12 = vcmp.eq.s32.totalorder %v34_v1, 13  ;;  %vm179_vm13 = vcmp.eq.s32.totalorder %v34_v1, 12  ;;  %vm215_vm14 = vcmp.eq.s32.totalorder %v34_v1, 15  ;;  %vm203_vm15 = vcmp.eq.s32.totalorder %v34_v1, 14  ;;  %v303_v36 = vld [vmem:[%s485_s2 + $0x5] ss:$0 sm:$0xff] }
  0x1a   :  { %v193_v14 = vsel %vm191_vm12, 1, %v377_v0  ;;  %v181_v15 = vsel %vm179_vm13, 1, %v377_v0  ;;  %v217_v16 = vsel %vm215_vm14, 1, %v377_v0  ;;  %v205_v17 = vsel %vm203_vm15, 1, %v377_v0  ;;  %v304_v37 = vld [vmem:[%s485_s2 + $0x6] ss:$0 sm:$0xff] }
  0x1b   :  { %v227_v19 = vmul.f32 %v415_v18, %v415_v18  ;;  %v305_v42 = vld [vmem:[%s485_s2 + $0x7] ss:$0 sm:$0xff]  ;;  %v307_v48 = vld [vmem:[%s485_s2 + $0x9] ss:$0 sm:$0xff]  ;;  %v308_v49 = vld [vmem:[%s485_s2 + $0xa] ss:$0 sm:$0xff] }
  0x1c   :  { %v309_v54 = vld [vmem:[%s485_s2 + $0xb] ss:$0 sm:$0xff]  ;;  %v310_v55 = vld [vmem:[%s485_s2 + $0xc] ss:$0 sm:$0xff]  ;;  %v311_v60 = vld [vmem:[%s485_s2 + $0xd] ss:$0 sm:$0xff] }
  0x1d   :  { %99 = vperm.xlu1 %319, %v97_v6   ;;  %87 = vperm.xlu0 %318, %v85_v7   ;;  %v312_v61 = vld [vmem:[%s485_s2 + $0xe] ss:$0 sm:$0xff]  ;;  %v313_v0 = vld [vmem:[%s485_s2 + $0xf] ss:$0 sm:$0xff]  ;;  %v378_v6 = vmov 0.0   ;;  %s379_s2 = smov [#allocation6]  }
  0x1e   :  { %s289_s27 = sshll.u32 %s379_s2, 4  ;;  %s290_s27 = int_to_ptr.vmem [resolvable:$true] %s289_s27 }
  0x1f   :  { %s350_s28 = scalar_lea.vmem %s290_s27, 16  ;;  %s354_s29 = scalar_lea.vmem %s290_s27, 32 }
  0x20   :  { %p351_p8 = scmp.ne.s32.totalorder %s290_s27, %s350_s28  ;;  %p355_p9 = scmp.lt.s32.totalorder %s290_s27, %s290_s27 }
  0x21   :  { %123 = vperm.xlu1 %319, %v121_v8   ;;  %111 = vperm.xlu0 %318, %v109_v9   ;;  %p356_p10 = scmp.lt.s32.totalorder %s354_s29, %s350_s28 }
  0x23   :  { %p357_p11 = por %p356_p10, %p355_p9 }
  0x25   :  { %147 = vperm.xlu1 %319, %v145_v10   ;;  %135 = vperm.xlu0 %318, %v133_v11   ;;  %p358_p12 = pnand %p357_p11, %p351_p8 }
  0x29   :  { %171 = vperm.xlu1 %319, %v169_v12   ;;  %159 = vperm.xlu0 %318, %v157_v13  }
  0x2d   :  { %195 = vperm.xlu1 %319, %v193_v14   ;;  %183 = vperm.xlu0 %318, %v181_v15  }
  0x31   :  { %219 = vperm.xlu1 %319, %v217_v16   ;;  %207 = vperm.xlu0 %318, %v205_v17  }
  0x50   :  { %228 = vadd.xlane.f32.xlu0 %v227_v19 }
  0x94   :  { %v64_v20 = vpop.permute.xlu1 %63  ;;  %v40_v21 = vpop.permute.xlu0 %39 }
  0x95   :  { %vm41_vm0 = vcmp.eq.s32.totalorder %v40_v21, 1  ;;  %vm65_vm2 = vcmp.eq.s32.totalorder %v64_v20, 1 }
  0x96   :  { %v46_v27 = vsel %vm41_vm0, %v298_v22, 0.0  ;;  %vm31_vm0 = vcmask 0  }
  0x97   :  { %32 = vst.msk [vmem:[#allocation2] sm:$0x1] %vm31_vm0, %v378_v6 }
  0x98   :  { %v76_v24 = vpop.permute.xlu1 %75  ;;  %v52_v26 = vpop.permute.xlu0 %51 }
  0x99   :  { %vm53_vm1 = vcmp.eq.s32.totalorder %v52_v26, 1  ;;  %vm77_vm3 = vcmp.eq.s32.totalorder %v76_v24, 1 }
  0x9a   :  { %v58_v29 = vsel %vm53_vm1, %v299_v23, %v46_v27 }
  0x9b   :  { %v70_v30 = vsel %vm65_vm2, %v300_v25, %v58_v29 }
  0x9c   :  { %v100_v32 = vpop.permute.xlu1 %99  ;;  %v82_v33 = vsel %vm77_vm3, %v301_v28, %v70_v30  ;;  %v88_v34 = vpop.permute.xlu0 %87 }
  0x9d   :  { %vm89_vm4 = vcmp.eq.s32.totalorder %v88_v34, 1  ;;  %vm101_vm5 = vcmp.eq.s32.totalorder %v100_v32, 1 }
  0x9e   :  { %v94_v35 = vsel %vm89_vm4, %v302_v31, %v82_v33  ;;  %v266_v33 = vld [vmem:[#allocation2] sm:$0x1] }
  0x9f   :  { %v106_v40 = vsel %vm101_vm5, %v303_v36, %v94_v35 }
  0xa0   :  { %v124_v38 = vpop.permute.xlu1 %123  ;;  %v112_v39 = vpop.permute.xlu0 %111 }
  0xa1   :  { %vm113_vm6 = vcmp.eq.s32.totalorder %v112_v39, 1  ;;  %vm125_vm7 = vcmp.eq.s32.totalorder %v124_v38, 1 }
  0xa2   :  { %v118_v41 = vsel %vm113_vm6, %v304_v37, %v106_v40 }
  0xa3   :  { %v130_v46 = vsel %vm125_vm7, %v305_v42, %v118_v41 }
  0xa4   :  { %v148_v44 = vpop.permute.xlu1 %147  ;;  %v136_v45 = vpop.permute.xlu0 %135 }
  0xa5   :  { %vm137_vm8 = vcmp.eq.s32.totalorder %v136_v45, 1  ;;  %vm149_vm9 = vcmp.eq.s32.totalorder %v148_v44, 1 }
  0xa6   :  { %v142_v47 = vsel %vm137_vm8, %v306_v43, %v130_v46 }
  0xa7   :  { %v154_v52 = vsel %vm149_vm9, %v307_v48, %v142_v47 }
  0xa8   :  { %v172_v50 = vpop.permute.xlu1 %171  ;;  %v160_v51 = vpop.permute.xlu0 %159 }
  0xa9   :  { %vm161_vm10 = vcmp.eq.s32.totalorder %v160_v51, 1  ;;  %vm173_vm11 = vcmp.eq.s32.totalorder %v172_v50, 1 }
  0xaa   :  { %v166_v53 = vsel %vm161_vm10, %v308_v49, %v154_v52 }
  0xab   :  { %v178_v58 = vsel %vm173_vm11, %v309_v54, %v166_v53 }
  0xac   :  { %v196_v56 = vpop.permute.xlu1 %195  ;;  %v184_v57 = vpop.permute.xlu0 %183 }
  0xad   :  { %vm185_vm12 = vcmp.eq.s32.totalorder %v184_v57, 1  ;;  %vm197_vm13 = vcmp.eq.s32.totalorder %v196_v56, 1 }
  0xae   :  { %v190_v59 = vsel %vm185_vm12, %v310_v55, %v178_v58 }
  0xaf   :  { %v202_v1 = vsel %vm197_vm13, %v311_v60, %v190_v59 }
  0xb0   :  { %v220_v62 = vpop.permute.xlu1 %219  ;;  %v208_v63 = vpop.permute.xlu0 %207 }
  0xb1   :  { %vm221_vm14 = vcmp.eq.s32.totalorder %v220_v62, 1  ;;  %vm209_vm15 = vcmp.eq.s32.totalorder %v208_v63, 1 }
  0xb2   :  { %v214_v2 = vsel %vm209_vm15, %v312_v61, %v202_v1 }
  0xb3   :  { %v226_v3 = vsel %vm221_vm14, %v313_v0, %v214_v2 }
  0xb4   :  { %v230_v4 = vmul.f32 %v226_v3, %v226_v3  ;;  %v233_v5 = vmul.f32 %v226_v3, %v415_v18 }
  0xb6   :  { %231 = vadd.xlane.f32.xlu1 %v230_v4  ;;  %234 = vadd.xlane.f32.xlu0 %v233_v5 }
  0xdd   :  { %v229_v7 = vpop.xlane.xlu0 %228 }
  0xde   :  { %320 = vrsqrt.f32 %v229_v7  ;;  %vm238_vm1 = vcmp.eq.f32.partialorder %v229_v7, inf  ;;  %v241_v10 = vand.u32 2147483648, %v229_v7  ;;  %vm240_vm2 = vcmp.eq.f32.partialorder %v229_v7, 0.0 }
  0xe8   :  { %v321_v8 = vpop.eup %320 }
  0xe9   :  { %v237_v9 = vmul.f32 %v321_v8, %v229_v7 }
  0xeb   :  { %v239_v11 = vsel %vm238_vm1, %v229_v7, %v237_v9 }
  0xec   :  { %v242_v12 = vsel %vm240_vm2, %v241_v10, %v239_v11 }
  0xed   :  { %v250_v13 = vmax.f32 %v242_v12, 1e-12 }
  0xef   :  { %322 = vrcp.f32 %v250_v13 }
  0xf9   :  { %v323_v15 = vpop.eup %322 }
  0xfa   :  { %v254_v20 = vmul.f32 %v323_v15, %v242_v12 }
 0x143   :  { %v232_v14 = vpop.xlane.xlu1 %231  ;;  %v235_v24 = vpop.xlane.xlu0 %234 }
 0x144   :  { %324 = vrsqrt.f32 %v232_v14  ;;  %vm245_vm3 = vcmp.eq.f32.partialorder %v232_v14, inf  ;;  %v248_v18 = vand.u32 2147483648, %v232_v14  ;;  %vm247_vm4 = vcmp.eq.f32.partialorder %v232_v14, 0.0 }
 0x145   :  { %v253_v25 = vmul.f32 %v323_v15, %v235_v24 }
 0x14e   :  { %v325_v16 = vpop.eup %324 }
 0x14f   :  { %v244_v17 = vmul.f32 %v325_v16, %v232_v14 }
 0x151   :  { %v246_v19 = vsel %vm245_vm3, %v232_v14, %v244_v17 }
 0x152   :  { %v249_v21 = vsel %vm247_vm4, %v248_v18, %v246_v19 }
 0x153   :  { %v255_v22 = vmul.f32 %v254_v20, %v249_v21 }
 0x155   :  { %v256_v23 = vmax.f32 %v255_v22, 1e-08 }
 0x157   :  { %326 = vrcp.f32 %v256_v23 }
 0x161   :  { %v327_v26 = vpop.eup %326 }
 0x162   :  { %v258_v27 = vmul.f32 %v327_v26, %v253_v25 }
 0x164   :  { %v267_v28 = vrot.slane %v258_v27, 4 }
 0x166   :  { %v268_v29 = vadd.f32 %v267_v28, %v258_v27 }
 0x168   :  { %v269_v30 = vrot.slane %v268_v29, 2 }
 0x16a   :  { %v270_v31 = vadd.f32 %v269_v30, %v268_v29 }
 0x16c   :  { %v271_v32 = vrot.slane %v270_v31, 1 }
 0x16e   :  { %v272_v34 = vadd.f32 %v271_v32, %v270_v31 }
 0x170   :  { %v273_v35 = vadd.f32 %v272_v34, %v266_v33 }
 0x172   :  { %275 = vst.msk [vmem:[#allocation2] sm:$0x1] %vm31_vm0, %v273_v35 }
 0x179   :  { %v279_v36 = vld [vmem:[#allocation2] sm:$0x1] }
 0x17a   :  { %v280_v37 = vmul.f32 0.125, %v279_v36 }
 0x17c   :  { %v281_v38 = vsub.f32 1.0, %v280_v37 }
 0x17e   :  { %282 = vst.msk [vmem:[#allocation6] sm:$0x1] %vm31_vm0, %v281_v38 }
 0x17f   :  { %361 = shalt.err (!%p358_p12)
}
 0x180   :  { %s362_s5 = scalar_lea.hbm %s486_s3, 16 }
 0x181   :  { %p363_p13 = scmp.ne.s32.totalorder %s486_s3, %s362_s5  ;;  %p366_p0 = scmp.lt.u32.totalorder %s362_s5, %s486_s3 }
 0x183   :  { %p368_p1 = pnand %p366_p0, %p363_p13 }
 0x185   :  { %371 = shalt.err (!%p368_p1)
}
 0x186   :  { %292 = dma.vmem_to_hbm [thread:$0]  %s290_s27, 16, %s486_s3, [#allocation5]  }
 0x187   :  { %374 = dma.done.wait [#allocation5], 16  }
 0x188   :  { %375 = vsyncadd [#allocation5], 4294967280 }
 0x189   :  { %296 = vsyncpa [#allocation4], 1 }
 0x18a   :  { %297 = vsyncpa [#allocation5], 1 }

</bundles_post_ra>
